<compile_context>
chip_gen: v5e
topology: v5e:2x2
jax: 0.10.0
libtpu: 0.0.40
codegen_flags: <defaults>
</compile_context>

<pallas_src>
import functools

import jax
import jax.numpy as jnp
import numpy as np
from jax.experimental import pallas as pl
from jax.experimental.pallas import tpu as pltpu


def _next_greater_power_of_2(x: int) -> int:
    return 2 ** (x - 1).bit_length()


# ---------------------------------------------------------------------------
# Pallas kernel
# ---------------------------------------------------------------------------
def _gcc_kernel(x_ref, wc_ref, ws_ref, ic_ref, is_ref, out_ref, *,
                n_mics, K, F, T2, use_phat, squeeze_pair):
    # x_ref  : [TB, M*K]   rows-tile, mics concatenated along lanes
    # wc_ref : [K, F]      forward real-DFT weight  cos(2*pi*t*f/N)
    # ws_ref : [K, F]      forward real-DFT weight -sin(2*pi*t*f/N)
    # ic_ref : [F, T2]     inverse-DFT weight  w_f *  cos(2*pi*f*t/N)
    # is_ref : [F, T2]     inverse-DFT weight  w_f * -sin(2*pi*f*t/N)
    # out_ref: [TB, P*T2]  lane-dense output slab (P = 1 or M*M)
    M = n_mics
    x = x_ref[...]
    wc = wc_ref[...]
    ws = ws_ref[...]
    ic = ic_ref[...]
    isn = is_ref[...]

    xr, xi = [], []
    for n in range(M):
        xn = x[:, n * K:(n + 1) * K]                                   # [TB, K]
        r = jnp.dot(xn, wc, preferred_element_type=jnp.float32)        # [TB, F]
        i = jnp.dot(xn, ws, preferred_element_type=jnp.float32)        # [TB, F]
        if use_phat:
            # approximates the reference X / (|X| + 1e-8)  (EUP rsqrt)
            inv = jax.lax.rsqrt(r * r + i * i + 1e-16)
            r = r * inv
            i = i * inv
        xr.append(r)
        xi.append(i)

    def cross(n, m):
        # G(n, m) = X_n * conj(X_m)
        re = xr[n] * xr[m] + xi[n] * xi[m]
        im = xi[n] * xr[m] - xr[n] * xi[m]
        a = jnp.dot(re, ic, preferred_element_type=jnp.float32)        # [TB, T2]
        b = jnp.dot(im, isn, preferred_element_type=jnp.float32)       # [TB, T2]
        return a, b

    if squeeze_pair:
        # n_mics == 2: the module keeps only pair (0, 1).
        a, b = cross(0, 1)
        out_ref[...] = a + b
        return

    for n in range(M):
        # diagonal pair: Im(G) == 0 exactly -> single matmul
        re_nn = xr[n] * xr[n] + xi[n] * xi[n]
        g_nn = jnp.dot(re_nn, ic, preferred_element_type=jnp.float32)
        p = n * M + n
        out_ref[:, p * T2:(p + 1) * T2] = g_nn
        for m in range(n + 1, M):
            a, b = cross(n, m)
            p_nm = n * M + m
            p_mn = m * M + n
            out_ref[:, p_nm * T2:(p_nm + 1) * T2] = a + b   # gcc(n, m)
            out_ref[:, p_mn * T2:(p_mn + 1) * T2] = a - b   # gcc(m, n) (Hermitian)


# ---------------------------------------------------------------------------
# Wrapper (DFT matrix setup, tiling, pallas_call, reshapes)
# ---------------------------------------------------------------------------
def gcc_forward(x, K, tau_max=None, transform=None, center=False, block_rows=512):
    assert transform is None or transform == "phat"
    assert not center, "center=False (PyTorch default) implemented"
    B, T, M, Kf = x.shape
    assert Kf == K

    n_dft = _next_greater_power_of_2(K)
    tau = tau_max if tau_max is not None else K // 2
    assert tau <= K // 2
    F = n_dft // 2 + 1
    T2 = 2 * tau

    # ---- constant DFT matrices (built once at trace time, float64 -> f32) ----
    t_in = np.arange(K, dtype=np.float64)
    f = np.arange(F, dtype=np.float64)
    ang_f = 2.0 * np.pi * np.outer(t_in, f) / n_dft                    # [K, F]
    Wc = np.cos(ang_f)                                                 # [K, F]
    Ws = -np.sin(ang_f)                                                # [K, F]

    # inverse real-DFT evaluated only at the 2*tau output lags
    t_out = np.concatenate([np.arange(tau), np.arange(n_dft - tau, n_dft)]).astype(np.float64)
    w = np.full((F,), 2.0 / n_dft)
    w[0] = 1.0 / n_dft
    w[-1] = 1.0 / n_dft                                                # Nyquist (n_dft even)
    ang_i = 2.0 * np.pi * np.outer(f, t_out) / n_dft                   # [F, T2]
    IC = w[:, None] * np.cos(ang_i)                                    # [F, T2]
    IS = -(w[:, None]) * np.sin(ang_i)                                 # [F, T2]

    Wc = jnp.asarray(Wc, jnp.float32)
    Ws = jnp.asarray(Ws, jnp.float32)
    IC = jnp.asarray(IC, jnp.float32)
    IS = jnp.asarray(IS, jnp.float32)
    w_bytes = (Wc.size + Ws.size + IC.size + IS.size) * 4

    squeeze_pair = (M == 2)
    P = 1 if squeeze_pair else M * M

    # ---- row tiling ----
    BT = B * T
    tb = min(block_rows, BT)
    if BT > 8 and pl.cdiv(BT, tb) < 2:
        tb = (BT + 1) // 2          # keep >= 2 grid steps so both cores share the work
    if BT >= 8:
        tb = max(8, ((tb + 7) // 8) * 8)
    else:
        tb = BT

    # shrink tile until double-buffered working set comfortably fits VMEM
    def _vmem_est(t):
        io = 2 * (t * M * K + t * P * T2) * 4          # double-buffered in/out tiles
        inter = t * (2 * M * F + 4 * F + 2 * T2) * 4   # live intermediates (rough)
        return io + inter + w_bytes + (2 << 20)
    while tb > 8 and _vmem_est(tb) > (40 << 20):
        tb = max(8, ((tb // 2) + 7) // 8 * 8)
    vmem_est = _vmem_est(tb)
    vmem_limit = min(int(vmem_est * 1.3), 64 << 20) if vmem_est > (30 << 20) else None

    grid = pl.cdiv(BT, tb)
    BTp = grid * tb

    # free, contiguous reshape: [B, T, M, K] -> [B*T, M*K]
    x2 = x.reshape(BT, M * K).astype(jnp.float32)
    if BTp != BT:
        x2 = jnp.pad(x2, ((0, BTp - BT), (0, 0)))

    kernel = functools.partial(
        _gcc_kernel, n_mics=M, K=K, F=F, T2=T2,
        use_phat=(transform == "phat"), squeeze_pair=squeeze_pair)

    n_inv_dots = 1 if squeeze_pair else M * M           # Re/Im matmul count ~ M + M(M-1) = M*M
    flops = BTp * (M * 2 * 2 * K * F                    # forward DFT matmuls
                   + n_inv_dots * 2 * F * T2            # inverse DFT matmuls
                   + (1 if squeeze_pair else M * M) * 6 * F)  # cross-spectra elementwise
    transc = BTp * M * F if transform == "phat" else 0
    bytes_accessed = x2.size * 4 + w_bytes + BTp * P * T2 * 4

    out2 = pl.pallas_call(
        kernel,
        out_shape=jax.ShapeDtypeStruct((BTp, P * T2), jnp.float32),
        grid_spec=pltpu.PrefetchScalarGridSpec(
            num_scalar_prefetch=0,
            grid=(grid,),
            in_specs=[
                pl.BlockSpec((tb, M * K), lambda i: (i, 0)),
                pl.BlockSpec((K, F), lambda i: (0, 0)),
                pl.BlockSpec((K, F), lambda i: (0, 0)),
                pl.BlockSpec((F, T2), lambda i: (0, 0)),
                pl.BlockSpec((F, T2), lambda i: (0, 0)),
            ],
            out_specs=pl.BlockSpec((tb, P * T2), lambda i: (i, 0)),
        ),
        compiler_params=pltpu.CompilerParams(
            dimension_semantics=("parallel",),
            vmem_limit_bytes=vmem_limit,
        ),
        cost_estimate=pl.CostEstimate(
            flops=int(flops), transcendentals=int(transc),
            bytes_accessed=int(bytes_accessed)),
    )(x2, Wc, Ws, IC, IS)

    out2 = out2[:BT]
    # TODO(synk): concat_bins=True path (stacks a constant lag-index plane) not
    # wired; module default is concat_bins=False.  center=True not implemented
    # (module default is center=False).
    if squeeze_pair:
        return out2.reshape(B, T, T2)
    return out2.reshape(B, T, M, M, T2)


# ---------------------------------------------------------------------------
# Pure-JAX reference (FFT based) for validation
# ---------------------------------------------------------------------------
def gcc_reference(x, K, tau_max=None, transform=None):
    n_dft = _next_greater_power_of_2(K)
    tau = tau_max if tau_max is not None else K // 2
    X = jnp.fft.rfft(x, n=n_dft, axis=-1)
    if transform == "phat":
        X = X / (jnp.abs(X) + 1e-8)
    G = X[:, :, :, None, :] * jnp.conj(X)[:, :, None, :, :]   # [B,T,n,m,F]
    g = jnp.fft.irfft(G, axis=-1)                             # [B,T,n,m,n_dft]
    gcc = jnp.concatenate([g[..., :tau], g[..., -tau:]], axis=-1)
    if x.shape[2] == 2:
        gcc = gcc[:, :, 0, 1, :]
    return gcc.astype(jnp.float32)


if __name__ == "__main__":
    K = 16
    key = jax.random.PRNGKey(0)
    k1, k2 = jax.random.split(key)

    # n_mics = 4: full M x M output path.
    x4 = jax.random.normal(k1, (2, 8, 4, K), dtype=jnp.float32)
    out4 = jax.block_until_ready(gcc_forward(x4, K=K, tau_max=None, transform=None))
    ref4 = gcc_reference(x4, K=K, tau_max=None, transform=None)
    np.testing.assert_allclose(np.asarray(out4), np.asarray(ref4), rtol=5e-2, atol=5e-2)

    # n_mics = 2 with PHAT: squeezed single-pair fast path.
    x2 = jax.random.normal(k2, (2, 8, 2, K), dtype=jnp.float32)
    out2 = jax.block_until_ready(gcc_forward(x2, K=K, tau_max=None, transform="phat"))
    ref2 = gcc_reference(x2, K=K, tau_max=None, transform="phat")
    np.testing.assert_allclose(np.asarray(out2), np.asarray(ref2), rtol=5e-2, atol=5e-2)

    print("KERNEL_OK")
</pallas_src>

<mosaic_0001>
module attributes {stable_mosaic.version = 11 : i64} {
  func.func @_gcc_kernel(%arg0: i32, %arg1: memref<8x64xf32, #tpu.memory_space<vmem>>, %arg2: memref<16x9xf32, #tpu.memory_space<vmem>>, %arg3: memref<16x9xf32, #tpu.memory_space<vmem>>, %arg4: memref<9x16xf32, #tpu.memory_space<vmem>>, %arg5: memref<9x16xf32, #tpu.memory_space<vmem>>, %arg6: memref<8x256xf32, #tpu.memory_space<vmem>>) attributes {dimension_semantics = [#tpu.dimension_semantics<parallel>], iteration_bounds = array<i64: 2>, scalar_prefetch = 0 : i64, scratch_operands = 0 : i64, tpu.core_type = #tpu.core_type<tc>, window_params = [{transform_indices = @transform_0, window_bounds = array<i64: 8, 64>}, {pipeline_mode = #tpu.pipeline_mode<synchronous>, transform_indices = @transform_1, window_bounds = array<i64: 16, 9>}, {pipeline_mode = #tpu.pipeline_mode<synchronous>, transform_indices = @transform_2, window_bounds = array<i64: 16, 9>}, {pipeline_mode = #tpu.pipeline_mode<synchronous>, transform_indices = @transform_3, window_bounds = array<i64: 9, 16>}, {pipeline_mode = #tpu.pipeline_mode<synchronous>, transform_indices = @transform_4, window_bounds = array<i64: 9, 16>}, {transform_indices = @transform_5, window_bounds = array<i64: 8, 256>}]} {
    %c0 = arith.constant 0 : index
    %c0_0 = arith.constant 0 : index
    %0 = vector.load %arg1[%c0, %c0_0] : memref<8x64xf32, #tpu.memory_space<vmem>>, vector<8x64xf32>
    %c0_1 = arith.constant 0 : index
    %c0_2 = arith.constant 0 : index
    %1 = vector.load %arg2[%c0_1, %c0_2] : memref<16x9xf32, #tpu.memory_space<vmem>>, vector<16x9xf32>
    %c0_3 = arith.constant 0 : index
    %c0_4 = arith.constant 0 : index
    %2 = vector.load %arg3[%c0_3, %c0_4] : memref<16x9xf32, #tpu.memory_space<vmem>>, vector<16x9xf32>
    %c0_5 = arith.constant 0 : index
    %c0_6 = arith.constant 0 : index
    %3 = vector.load %arg4[%c0_5, %c0_6] : memref<9x16xf32, #tpu.memory_space<vmem>>, vector<9x16xf32>
    %c0_7 = arith.constant 0 : index
    %c0_8 = arith.constant 0 : index
    %4 = vector.load %arg5[%c0_7, %c0_8] : memref<9x16xf32, #tpu.memory_space<vmem>>, vector<9x16xf32>
    %5 = vector.extract_strided_slice %0 {offsets = [0, 0], sizes = [8, 16], strides = [1, 1]} : vector<8x64xf32> to vector<8x16xf32>
    %cst = arith.constant dense<0.000000e+00> : vector<8x9xf32>
    %6 = tpu.matmul %5, %1, %cst {dimension_numbers = #tpu.dot_dimension_numbers<[1], [0], [0], [1], [0, 0, 1, 1], [], []>} : vector<8x16xf32>, vector<16x9xf32>, vector<8x9xf32> -> vector<8x9xf32>
    %cst_9 = arith.constant dense<0.000000e+00> : vector<8x9xf32>
    %7 = tpu.matmul %5, %2, %cst_9 {dimension_numbers = #tpu.dot_dimension_numbers<[1], [0], [0], [1], [0, 0, 1, 1], [], []>} : vector<8x16xf32>, vector<16x9xf32>, vector<8x9xf32> -> vector<8x9xf32>
    %8 = vector.extract_strided_slice %0 {offsets = [0, 16], sizes = [8, 16], strides = [1, 1]} : vector<8x64xf32> to vector<8x16xf32>
    %cst_10 = arith.constant dense<0.000000e+00> : vector<8x9xf32>
    %9 = tpu.matmul %8, %1, %cst_10 {dimension_numbers = #tpu.dot_dimension_numbers<[1], [0], [0], [1], [0, 0, 1, 1], [], []>} : vector<8x16xf32>, vector<16x9xf32>, vector<8x9xf32> -> vector<8x9xf32>
    %cst_11 = arith.constant dense<0.000000e+00> : vector<8x9xf32>
    %10 = tpu.matmul %8, %2, %cst_11 {dimension_numbers = #tpu.dot_dimension_numbers<[1], [0], [0], [1], [0, 0, 1, 1], [], []>} : vector<8x16xf32>, vector<16x9xf32>, vector<8x9xf32> -> vector<8x9xf32>
    %11 = vector.extract_strided_slice %0 {offsets = [0, 32], sizes = [8, 16], strides = [1, 1]} : vector<8x64xf32> to vector<8x16xf32>
    %cst_12 = arith.constant dense<0.000000e+00> : vector<8x9xf32>
    %12 = tpu.matmul %11, %1, %cst_12 {dimension_numbers = #tpu.dot_dimension_numbers<[1], [0], [0], [1], [0, 0, 1, 1], [], []>} : vector<8x16xf32>, vector<16x9xf32>, vector<8x9xf32> -> vector<8x9xf32>
    %cst_13 = arith.constant dense<0.000000e+00> : vector<8x9xf32>
    %13 = tpu.matmul %11, %2, %cst_13 {dimension_numbers = #tpu.dot_dimension_numbers<[1], [0], [0], [1], [0, 0, 1, 1], [], []>} : vector<8x16xf32>, vector<16x9xf32>, vector<8x9xf32> -> vector<8x9xf32>
    %14 = vector.extract_strided_slice %0 {offsets = [0, 48], sizes = [8, 16], strides = [1, 1]} : vector<8x64xf32> to vector<8x16xf32>
    %cst_14 = arith.constant dense<0.000000e+00> : vector<8x9xf32>
    %15 = tpu.matmul %14, %1, %cst_14 {dimension_numbers = #tpu.dot_dimension_numbers<[1], [0], [0], [1], [0, 0, 1, 1], [], []>} : vector<8x16xf32>, vector<16x9xf32>, vector<8x9xf32> -> vector<8x9xf32>
    %cst_15 = arith.constant dense<0.000000e+00> : vector<8x9xf32>
    %16 = tpu.matmul %14, %2, %cst_15 {dimension_numbers = #tpu.dot_dimension_numbers<[1], [0], [0], [1], [0, 0, 1, 1], [], []>} : vector<8x16xf32>, vector<16x9xf32>, vector<8x9xf32> -> vector<8x9xf32>
    %17 = arith.mulf %6, %6 : vector<8x9xf32>
    %18 = arith.mulf %7, %7 : vector<8x9xf32>
    %19 = arith.addf %17, %18 : vector<8x9xf32>
    %cst_16 = arith.constant dense<0.000000e+00> : vector<8x16xf32>
    %20 = tpu.matmul %19, %3, %cst_16 {dimension_numbers = #tpu.dot_dimension_numbers<[1], [0], [0], [1], [0, 0, 1, 1], [], []>} : vector<8x9xf32>, vector<9x16xf32>, vector<8x16xf32> -> vector<8x16xf32>
    %c0_17 = arith.constant 0 : index
    %c0_18 = arith.constant 0 : index
    %21 = vector.load %arg6[%c0_17, %c0_18] : memref<8x256xf32, #tpu.memory_space<vmem>>, vector<8x16xf32>
    tpu.vector_store %arg6[%c0_17, %c0_18], %20 {strides = array<i32>} : memref<8x256xf32, #tpu.memory_space<vmem>>, vector<8x16xf32>,
    %22 = arith.mulf %6, %9 : vector<8x9xf32>
    %23 = arith.mulf %7, %10 : vector<8x9xf32>
    %24 = arith.addf %22, %23 : vector<8x9xf32>
    %25 = arith.mulf %7, %9 : vector<8x9xf32>
    %26 = arith.mulf %6, %10 : vector<8x9xf32>
    %27 = arith.subf %25, %26 : vector<8x9xf32>
    %cst_19 = arith.constant dense<0.000000e+00> : vector<8x16xf32>
    %28 = tpu.matmul %24, %3, %cst_19 {dimension_numbers = #tpu.dot_dimension_numbers<[1], [0], [0], [1], [0, 0, 1, 1], [], []>} : vector<8x9xf32>, vector<9x16xf32>, vector<8x16xf32> -> vector<8x16xf32>
    %cst_20 = arith.constant dense<0.000000e+00> : vector<8x16xf32>
    %29 = tpu.matmul %27, %4, %cst_20 {dimension_numbers = #tpu.dot_dimension_numbers<[1], [0], [0], [1], [0, 0, 1, 1], [], []>} : vector<8x9xf32>, vector<9x16xf32>, vector<8x16xf32> -> vector<8x16xf32>
    %30 = arith.addf %28, %29 : vector<8x16xf32>
    %c0_21 = arith.constant 0 : index
    %c16 = arith.constant 16 : index
    %31 = vector.load %arg6[%c0_21, %c16] : memref<8x256xf32, #tpu.memory_space<vmem>>, vector<8x16xf32>
    tpu.vector_store %arg6[%c0_21, %c16], %30 {strides = array<i32>} : memref<8x256xf32, #tpu.memory_space<vmem>>, vector<8x16xf32>,
    %32 = arith.subf %28, %29 : vector<8x16xf32>
    %c0_22 = arith.constant 0 : index
    %c64 = arith.constant 64 : index
    %33 = vector.load %arg6[%c0_22, %c64] : memref<8x256xf32, #tpu.memory_space<vmem>>, vector<8x16xf32>
    tpu.vector_store %arg6[%c0_22, %c64], %32 {strides = array<i32>} : memref<8x256xf32, #tpu.memory_space<vmem>>, vector<8x16xf32>,
    %34 = arith.mulf %6, %12 : vector<8x9xf32>
    %35 = arith.mulf %7, %13 : vector<8x9xf32>
    %36 = arith.addf %34, %35 : vector<8x9xf32>
    %37 = arith.mulf %7, %12 : vector<8x9xf32>
    %38 = arith.mulf %6, %13 : vector<8x9xf32>
    %39 = arith.subf %37, %38 : vector<8x9xf32>
    %cst_23 = arith.constant dense<0.000000e+00> : vector<8x16xf32>
    %40 = tpu.matmul %36, %3, %cst_23 {dimension_numbers = #tpu.dot_dimension_numbers<[1], [0], [0], [1], [0, 0, 1, 1], [], []>} : vector<8x9xf32>, vector<9x16xf32>, vector<8x16xf32> -> vector<8x16xf32>
    %cst_24 = arith.constant dense<0.000000e+00> : vector<8x16xf32>
    %41 = tpu.matmul %39, %4, %cst_24 {dimension_numbers = #tpu.dot_dimension_numbers<[1], [0], [0], [1], [0, 0, 1, 1], [], []>} : vector<8x9xf32>, vector<9x16xf32>, vector<8x16xf32> -> vector<8x16xf32>
    %42 = arith.addf %40, %41 : vector<8x16xf32>
    %c0_25 = arith.constant 0 : index
    %c32 = arith.constant 32 : index
    %43 = vector.load %arg6[%c0_25, %c32] : memref<8x256xf32, #tpu.memory_space<vmem>>, vector<8x16xf32>
    tpu.vector_store %arg6[%c0_25, %c32], %42 {strides = array<i32>} : memref<8x256xf32, #tpu.memory_space<vmem>>, vector<8x16xf32>,
    %44 = arith.subf %40, %41 : vector<8x16xf32>
    %c0_26 = arith.constant 0 : index
    %c128 = arith.constant 128 : index
    %45 = vector.load %arg6[%c0_26, %c128] : memref<8x256xf32, #tpu.memory_space<vmem>>, vector<8x16xf32>
    tpu.vector_store %arg6[%c0_26, %c128], %44 {strides = array<i32>} : memref<8x256xf32, #tpu.memory_space<vmem>>, vector<8x16xf32>,
    %46 = arith.mulf %6, %15 : vector<8x9xf32>
    %47 = arith.mulf %7, %16 : vector<8x9xf32>
    %48 = arith.addf %46, %47 : vector<8x9xf32>
    %49 = arith.mulf %7, %15 : vector<8x9xf32>
    %50 = arith.mulf %6, %16 : vector<8x9xf32>
    %51 = arith.subf %49, %50 : vector<8x9xf32>
    %cst_27 = arith.constant dense<0.000000e+00> : vector<8x16xf32>
    %52 = tpu.matmul %48, %3, %cst_27 {dimension_numbers = #tpu.dot_dimension_numbers<[1], [0], [0], [1], [0, 0, 1, 1], [], []>} : vector<8x9xf32>, vector<9x16xf32>, vector<8x16xf32> -> vector<8x16xf32>
    %cst_28 = arith.constant dense<0.000000e+00> : vector<8x16xf32>
    %53 = tpu.matmul %51, %4, %cst_28 {dimension_numbers = #tpu.dot_dimension_numbers<[1], [0], [0], [1], [0, 0, 1, 1], [], []>} : vector<8x9xf32>, vector<9x16xf32>, vector<8x16xf32> -> vector<8x16xf32>
    %54 = arith.addf %52, %53 : vector<8x16xf32>
    %c0_29 = arith.constant 0 : index
    %c48 = arith.constant 48 : index
    %55 = vector.load %arg6[%c0_29, %c48] : memref<8x256xf32, #tpu.memory_space<vmem>>, vector<8x16xf32>
    tpu.vector_store %arg6[%c0_29, %c48], %54 {strides = array<i32>} : memref<8x256xf32, #tpu.memory_space<vmem>>, vector<8x16xf32>,
    %56 = arith.subf %52, %53 : vector<8x16xf32>
    %c0_30 = arith.constant 0 : index
    %c192 = arith.constant 192 : index
    %57 = vector.load %arg6[%c0_30, %c192] : memref<8x256xf32, #tpu.memory_space<vmem>>, vector<8x16xf32>
    tpu.vector_store %arg6[%c0_30, %c192], %56 {strides = array<i32>} : memref<8x256xf32, #tpu.memory_space<vmem>>, vector<8x16xf32>,
    %58 = arith.mulf %9, %9 : vector<8x9xf32>
    %59 = arith.mulf %10, %10 : vector<8x9xf32>
    %60 = arith.addf %58, %59 : vector<8x9xf32>
    %cst_31 = arith.constant dense<0.000000e+00> : vector<8x16xf32>
    %61 = tpu.matmul %60, %3, %cst_31 {dimension_numbers = #tpu.dot_dimension_numbers<[1], [0], [0], [1], [0, 0, 1, 1], [], []>} : vector<8x9xf32>, vector<9x16xf32>, vector<8x16xf32> -> vector<8x16xf32>
    %c0_32 = arith.constant 0 : index
    %c80 = arith.constant 80 : index
    %62 = vector.load %arg6[%c0_32, %c80] : memref<8x256xf32, #tpu.memory_space<vmem>>, vector<8x16xf32>
    tpu.vector_store %arg6[%c0_32, %c80], %61 {strides = array<i32>} : memref<8x256xf32, #tpu.memory_space<vmem>>, vector<8x16xf32>,
    %63 = arith.mulf %9, %12 : vector<8x9xf32>
    %64 = arith.mulf %10, %13 : vector<8x9xf32>
    %65 = arith.addf %63, %64 : vector<8x9xf32>
    %66 = arith.mulf %10, %12 : vector<8x9xf32>
    %67 = arith.mulf %9, %13 : vector<8x9xf32>
    %68 = arith.subf %66, %67 : vector<8x9xf32>
    %cst_33 = arith.constant dense<0.000000e+00> : vector<8x16xf32>
    %69 = tpu.matmul %65, %3, %cst_33 {dimension_numbers = #tpu.dot_dimension_numbers<[1], [0], [0], [1], [0, 0, 1, 1], [], []>} : vector<8x9xf32>, vector<9x16xf32>, vector<8x16xf32> -> vector<8x16xf32>
    %cst_34 = arith.constant dense<0.000000e+00> : vector<8x16xf32>
    %70 = tpu.matmul %68, %4, %cst_34 {dimension_numbers = #tpu.dot_dimension_numbers<[1], [0], [0], [1], [0, 0, 1, 1], [], []>} : vector<8x9xf32>, vector<9x16xf32>, vector<8x16xf32> -> vector<8x16xf32>
    %71 = arith.addf %69, %70 : vector<8x16xf32>
    %c0_35 = arith.constant 0 : index
    %c96 = arith.constant 96 : index
    %72 = vector.load %arg6[%c0_35, %c96] : memref<8x256xf32, #tpu.memory_space<vmem>>, vector<8x16xf32>
    tpu.vector_store %arg6[%c0_35, %c96], %71 {strides = array<i32>} : memref<8x256xf32, #tpu.memory_space<vmem>>, vector<8x16xf32>,
    %73 = arith.subf %69, %70 : vector<8x16xf32>
    %c0_36 = arith.constant 0 : index
    %c144 = arith.constant 144 : index
    %74 = vector.load %arg6[%c0_36, %c144] : memref<8x256xf32, #tpu.memory_space<vmem>>, vector<8x16xf32>
    tpu.vector_store %arg6[%c0_36, %c144], %73 {strides = array<i32>} : memref<8x256xf32, #tpu.memory_space<vmem>>, vector<8x16xf32>,
    %75 = arith.mulf %9, %15 : vector<8x9xf32>
    %76 = arith.mulf %10, %16 : vector<8x9xf32>
    %77 = arith.addf %75, %76 : vector<8x9xf32>
    %78 = arith.mulf %10, %15 : vector<8x9xf32>
    %79 = arith.mulf %9, %16 : vector<8x9xf32>
    %80 = arith.subf %78, %79 : vector<8x9xf32>
    %cst_37 = arith.constant dense<0.000000e+00> : vector<8x16xf32>
    %81 = tpu.matmul %77, %3, %cst_37 {dimension_numbers = #tpu.dot_dimension_numbers<[1], [0], [0], [1], [0, 0, 1, 1], [], []>} : vector<8x9xf32>, vector<9x16xf32>, vector<8x16xf32> -> vector<8x16xf32>
    %cst_38 = arith.constant dense<0.000000e+00> : vector<8x16xf32>
    %82 = tpu.matmul %80, %4, %cst_38 {dimension_numbers = #tpu.dot_dimension_numbers<[1], [0], [0], [1], [0, 0, 1, 1], [], []>} : vector<8x9xf32>, vector<9x16xf32>, vector<8x16xf32> -> vector<8x16xf32>
    %83 = arith.addf %81, %82 : vector<8x16xf32>
    %c0_39 = arith.constant 0 : index
    %c112 = arith.constant 112 : index
    %84 = vector.load %arg6[%c0_39, %c112] : memref<8x256xf32, #tpu.memory_space<vmem>>, vector<8x16xf32>
    tpu.vector_store %arg6[%c0_39, %c112], %83 {strides = array<i32>} : memref<8x256xf32, #tpu.memory_space<vmem>>, vector<8x16xf32>,
    %85 = arith.subf %81, %82 : vector<8x16xf32>
    %c0_40 = arith.constant 0 : index
    %c208 = arith.constant 208 : index
    %86 = vector.load %arg6[%c0_40, %c208] : memref<8x256xf32, #tpu.memory_space<vmem>>, vector<8x16xf32>
    tpu.vector_store %arg6[%c0_40, %c208], %85 {strides = array<i32>} : memref<8x256xf32, #tpu.memory_space<vmem>>, vector<8x16xf32>,
    %87 = arith.mulf %12, %12 : vector<8x9xf32>
    %88 = arith.mulf %13, %13 : vector<8x9xf32>
    %89 = arith.addf %87, %88 : vector<8x9xf32>
    %cst_41 = arith.constant dense<0.000000e+00> : vector<8x16xf32>
    %90 = tpu.matmul %89, %3, %cst_41 {dimension_numbers = #tpu.dot_dimension_numbers<[1], [0], [0], [1], [0, 0, 1, 1], [], []>} : vector<8x9xf32>, vector<9x16xf32>, vector<8x16xf32> -> vector<8x16xf32>
    %c0_42 = arith.constant 0 : index
    %c160 = arith.constant 160 : index
    %91 = vector.load %arg6[%c0_42, %c160] : memref<8x256xf32, #tpu.memory_space<vmem>>, vector<8x16xf32>
    tpu.vector_store %arg6[%c0_42, %c160], %90 {strides = array<i32>} : memref<8x256xf32, #tpu.memory_space<vmem>>, vector<8x16xf32>,
    %92 = arith.mulf %12, %15 : vector<8x9xf32>
    %93 = arith.mulf %13, %16 : vector<8x9xf32>
    %94 = arith.addf %92, %93 : vector<8x9xf32>
    %95 = arith.mulf %13, %15 : vector<8x9xf32>
    %96 = arith.mulf %12, %16 : vector<8x9xf32>
    %97 = arith.subf %95, %96 : vector<8x9xf32>
    %cst_43 = arith.constant dense<0.000000e+00> : vector<8x16xf32>
    %98 = tpu.matmul %94, %3, %cst_43 {dimension_numbers = #tpu.dot_dimension_numbers<[1], [0], [0], [1], [0, 0, 1, 1], [], []>} : vector<8x9xf32>, vector<9x16xf32>, vector<8x16xf32> -> vector<8x16xf32>
    %cst_44 = arith.constant dense<0.000000e+00> : vector<8x16xf32>
    %99 = tpu.matmul %97, %4, %cst_44 {dimension_numbers = #tpu.dot_dimension_numbers<[1], [0], [0], [1], [0, 0, 1, 1], [], []>} : vector<8x9xf32>, vector<9x16xf32>, vector<8x16xf32> -> vector<8x16xf32>
    %100 = arith.addf %98, %99 : vector<8x16xf32>
    %c0_45 = arith.constant 0 : index
    %c176 = arith.constant 176 : index
    %101 = vector.load %arg6[%c0_45, %c176] : memref<8x256xf32, #tpu.memory_space<vmem>>, vector<8x16xf32>
    tpu.vector_store %arg6[%c0_45, %c176], %100 {strides = array<i32>} : memref<8x256xf32, #tpu.memory_space<vmem>>, vector<8x16xf32>,
    %102 = arith.subf %98, %99 : vector<8x16xf32>
    %c0_46 = arith.constant 0 : index
    %c224 = arith.constant 224 : index
    %103 = vector.load %arg6[%c0_46, %c224] : memref<8x256xf32, #tpu.memory_space<vmem>>, vector<8x16xf32>
    tpu.vector_store %arg6[%c0_46, %c224], %102 {strides = array<i32>} : memref<8x256xf32, #tpu.memory_space<vmem>>, vector<8x16xf32>,
    %104 = arith.mulf %15, %15 : vector<8x9xf32>
    %105 = arith.mulf %16, %16 : vector<8x9xf32>
    %106 = arith.addf %104, %105 : vector<8x9xf32>
    %cst_47 = arith.constant dense<0.000000e+00> : vector<8x16xf32>
    %107 = tpu.matmul %106, %3, %cst_47 {dimension_numbers = #tpu.dot_dimension_numbers<[1], [0], [0], [1], [0, 0, 1, 1], [], []>} : vector<8x9xf32>, vector<9x16xf32>, vector<8x16xf32> -> vector<8x16xf32>
    %c0_48 = arith.constant 0 : index
    %c240 = arith.constant 240 : index
    %108 = vector.load %arg6[%c0_48, %c240] : memref<8x256xf32, #tpu.memory_space<vmem>>, vector<8x16xf32>
    tpu.vector_store %arg6[%c0_48, %c240], %107 {strides = array<i32>} : memref<8x256xf32, #tpu.memory_space<vmem>>, vector<8x16xf32>,
    return
  }
  func.func @transform_0(%arg0: i32) -> (i32, i32) {
    %c0_i32 = arith.constant 0 : i32
    %c0_i32_0 = arith.constant 0 : i32
    return %arg0, %c0_i32 : i32, i32
  }
  func.func @transform_1(%arg0: i32) -> (i32, i32) {
    %c0_i32 = arith.constant 0 : i32
    %c0_i32_0 = arith.constant 0 : i32
    %c0_i32_1 = arith.constant 0 : i32
    return %c0_i32, %c0_i32_0 : i32, i32
  }
  func.func @transform_2(%arg0: i32) -> (i32, i32) {
    %c0_i32 = arith.constant 0 : i32
    %c0_i32_0 = arith.constant 0 : i32
    %c0_i32_1 = arith.constant 0 : i32
    return %c0_i32, %c0_i32_0 : i32, i32
  }
  func.func @transform_3(%arg0: i32) -> (i32, i32) {
    %c0_i32 = arith.constant 0 : i32
    %c0_i32_0 = arith.constant 0 : i32
    %c0_i32_1 = arith.constant 0 : i32
    return %c0_i32, %c0_i32_0 : i32, i32
  }
  func.func @transform_4(%arg0: i32) -> (i32, i32) {
    %c0_i32 = arith.constant 0 : i32
    %c0_i32_0 = arith.constant 0 : i32
    %c0_i32_1 = arith.constant 0 : i32
    return %c0_i32, %c0_i32_0 : i32, i32
  }
  func.func @transform_5(%arg0: i32) -> (i32, i32) {
    %c0_i32 = arith.constant 0 : i32
    %c0_i32_0 = arith.constant 0 : i32
    return %arg0, %c0_i32 : i32, i32
  }
}

</mosaic_0001>

<bundles_post_ra>
// kernel: tpu_custom_call.1
= control target key start
LH: loop header
LB: loop body
LE: loop exit
PB: predicated region body
PF: predicated region fallthrough
CT: control target
= control target key end

     0   :  { %10 = vsyncpa [#allocation3], 0  ;;  %s1860_s0 = inlined_call_operand.hbm [shape: f32[16,64], index: 0, kind: input, shape index: {}]   ;;  %s1861_s1 = inlined_call_operand.hbm [shape: f32[16,9], index: 1, kind: input, shape index: {}]   ;;  %s1862_s2 = inlined_call_operand.hbm [shape: f32[16,9], index: 2, kind: input, shape index: {}]   ;;  %s1863_s3 = inlined_call_operand.hbm [shape: f32[9,16], index: 3, kind: input, shape index: {}]   ;;  %s1864_s4 = inlined_call_operand.hbm [shape: f32[9,16], index: 4, kind: input, shape index: {}]   ;;  %s1865_s5 = inlined_call_operand.hbm [shape: f32[16,256], index: 5, kind: output, shape index: {}]  }
   0x1   :  { %12 = vsyncpa [#allocation3 + $0x1], 0 }
   0x2   :  { %13 = vsyncpa [#allocation6], 0 }
   0x3   :  { %14 = vsyncpa [#allocation9], 0 }
   0x4   :  { %15 = vsyncpa [#allocation4], 0 }
   0x5   :  { %17 = vsyncpa [#allocation4 + $0x1], 0  ;;  %s1560_s18 = smov 0   ;;  %s1562_s19 = smov 0  }
   0x6   :  { %s1564_s20 = smov 0   ;;  %s1566_s21 = smov 0  }
   0x7 LB: > { %s175_s24 = sshll.u32 %s1861_s1, 4  ;;  %s1584_s25 = sadd.s32 4294967295, %s1515_s21   ;;  %s1515_s21 = sphi %s1566_s21, %s1877_s21   ;;  %s1511_s20 = sphi %s1564_s20, %s1876_s20   ;;  %s1507_s19 = sphi %s1562_s19, %s1875_s19   ;;  %s1503_s18 = sphi %s1560_s18, %s1874_s18   ;;  %s176_s24 = int_to_ptr.hbm [resolvable:$true] %s175_s24 }
   0x8   : > { %p1134_p0 = scmp.ge.s32.totalorder %s1515_s21, 1  ;;  %p44_p1 = scmp.eq.s32.totalorder %s1584_s25, 0 }
   0x9   : > { %p164_p2 = scmp.lt.s32.totalorder %s1515_s21, 3  ;;  %s1517_s27 = smov [#allocation5]  }
   0xa   : > { %s177_s28 = sshll.u32 %s1517_s27, 4  ;;  %s203_s6 = sshll.u32 %s1863_s3, 4  ;;  %s178_s28 = int_to_ptr.vmem [resolvable:$true] %s177_s28  ;;  %s204_s6 = int_to_ptr.hbm [resolvable:$true] %s203_s6 }
   0xb   : > { %p1589_p3 = pnand %p1134_p0, %p164_p2  ;;  %s189_s10 = sshll.u32 %s1862_s2, 4  ;;  %s190_s10 = int_to_ptr.hbm [resolvable:$true] %s189_s10 }
   0xc   : > { %s1518_s11 = smov [#allocation8]   ;;  %s1519_s13 = smov 128  }
   0xd   : > { %p1215_p4 = pneg %p1589_p3  ;;  %s205_s12 = sshll.u32 %s1518_s11, 4  ;;  %s206_s12 = int_to_ptr.vmem [resolvable:$true] %s205_s12 }
   0xe   : > { %s1520_s14 = smov 8   ;;  %s217_s17 = sshll.u32 %s1864_s4, 4  ;;  %s218_s17 = int_to_ptr.hbm [resolvable:$true] %s217_s17 }
   0xf   : > { %p1601_p6 = pnand %p1215_p4, %p44_p1  ;;  %s1521_s22 = smov [#allocation7]  }
  0x10   : > { %s191_s23 = sshll.u32 %s1521_s22, 4  ;;  %s1621_s29 = sadd.s32 1, %s1515_s21   ;;  %s192_s23 = int_to_ptr.vmem [resolvable:$true] %s191_s23 }
  0x11   : > { %1218 = dma.hbm_to_vmem [thread:$0]  (!%p1601_p6), %s176_s24, 256, %s178_s28, [#allocation6], %s1519_s13, %s1519_s13, %s1520_s14  }
  0x12   : > { %1224 = dma.hbm_to_vmem [thread:$0]  (!%p1601_p6), %s204_s6, 256, %s206_s12, [#allocation9], %s1519_s13, %s1519_s13, %s1520_s14  }
  0x13   : > { %1221 = dma.hbm_to_vmem [thread:$0]  (!%p1601_p6), %s190_s10, 256, %s192_s23, [#allocation6], %s1519_s13, %s1519_s13, %s1520_s14  }
  0x14   : > { %s1522_s24 = smov [#allocation10]   ;;  %s1133_s28 = sadd.s32 4294967294, %s1515_s21  }
  0x15   : > { %s219_s27 = sshll.u32 %s1522_s24, 4  ;;  %s27_s30 = ssub.s32 %s1515_s21, %s1621_s29  ;;  %s220_s27 = int_to_ptr.vmem [resolvable:$true] %s219_s27 }
  0x16   : > { %1227 = dma.hbm_to_vmem [thread:$0]  (!%p1601_p6), %s218_s17, 256, %s220_s27, [#allocation9], %s1519_s13, %s1519_s13, %s1520_s14  }
  0x17   : > { %s30_s6 = sadd.s32 1, %s1511_s20  ;;  %p28_p7 = scmp.eq.s32.totalorder %s27_s30, 0 }
  0x18   : > { %p37_p8 = scmp.ne.s32.totalorder %s1511_s20, %s1507_s19  ;;  %p38_p9 = scmp.eq.s32.totalorder %s1515_s21, 0 }
  0x19   : > { %p43_p10 = scmp.ne.s32.totalorder %s1507_s19, %s1503_s18  ;;  %p151_p13 = scmp.eq.s32.totalorder %s1584_s25, 1 }
  0x1a   : > { %s1632_s8 = scalar_select %p28_p7, %s1511_s20, %s30_s6  }
  0x1b   : > { %p1634_p11 = por %p38_p9, %p37_p8  ;;  %p1640_p12 = por %p44_p1, %p43_p10 }
  0x1c   : > { %p157_p0 = scmp.eq.s32.totalorder %s1133_s28, 1  ;;  %p1240_p2 = scmp.lt.s32.totalorder %s1515_s21, 2 }
  0x1d   : > { %s233_s10 = sand.u32 1, %s1511_s20   ;;  %p1647_p4 = por %p151_p13, %p37_p8 }
  0x1e   : > { %p1651_p6 = por %p157_p0, %p43_p10  ;;  %s1140_s13 = sshll.u32 %s233_s10, 3 }
  0x1f   : > { %s1141_s14 = sshll.u32 %s1515_s21, 3  ;;  %s237_s22 = scalar_lea.vmem [#allocation2], %s1140_s13 }
  0x20   : > { %s241_s17 = scalar_lea.hbm %s1860_s0, %s1141_s14  ;;  %s245_s23 = sshll.u32 %s237_s22, 4  ;;  %s246_s23 = int_to_ptr.vmem [resolvable:$true] %s245_s23 }
  0x21   : > { %s243_s24 = sshll.u32 %s241_s17, 4  ;;  %p1661_p7 = pnand %p1240_p2, %p1634_p11  ;;  %s244_s24 = int_to_ptr.hbm [resolvable:$true] %s243_s24 }
  0x22   : > { %s234_s28 = scalar_lea.sflag [#allocation3], %s233_s10  ;;  %s1411_s30 = sshra.s32 %s244_s24, 4  ;;  %s1412_s30 = int_to_ptr.hbm [resolvable:$true] %s1411_s30 }
  0x23   : > { %s1413_s6 = scalar_lea.hbm %s1412_s30, 8  ;;  %p1415_p9 = pneg %p1661_p7 }
  0x24   : > { %p1414_p8 = scmp.ne.s32.totalorder %s1412_s30, %s1413_s6  ;;  %s1418_s15 = scalar_lea.hbm %s1860_s0, 16 }
  0x25   : > { %p1419_p11 = scmp.lt.s32.totalorder %s1412_s30, %s1860_s0  ;;  %p1420_p0 = scmp.lt.s32.totalorder %s1418_s15, %s1413_s6 }
  0x26   : > { %p1416_p10 = pnand %p1415_p9, %p1414_p8 }
  0x27   : > { %p1421_p2 = por %p1420_p0, %p1419_p11 }
  0x28   : > { %p1417_p13 = pneg %p1416_p10 }
  0x2a   : > { %p1422_p5 = pnand %p1421_p2, %p1417_p13 }
  0x2c   : > { %1425 = shalt.err (!%p1422_p5)
}
  0x2d   : > { %1231 = dma.hbm_to_vmem [thread:$0]  (!%p1661_p7), %s244_s24, 128, %s246_s23, %s234_s28  }
  0x2e   : > { %254 = sbr.rel (%p1589_p3) target bundleno = 592 (0x250), region = 40  ;;  %s1678_s10 = sand.u32 (!%p1589_p3), 1, %s1507_s19  }
  0x2f   : > { %s1143_s17 = sshll.u32 (!%p1589_p3), %s1678_s10, 3  ;;  %s257_s22 = scalar_lea.sflag (!%p1589_p3), [#allocation3], %s1678_s10 }
  0x30   : > { %s260_s13 = scalar_lea.vmem (!%p1589_p3), [#allocation2], %s1143_s17 }
  0x33   : > { %1486 = dma.done.wait (%p1640_p12), %s257_s22, 128  }
  0x34   : > { %1488 = vsyncadd (%p1640_p12), %s257_s22, 4294967168 }
  0x35   : > { %1490 = dma.done.wait (%p44_p1), [#allocation6], 512  }
  0x36   : > { %1492 = vsyncadd (%p44_p1), [#allocation6], 4294966784 }
  0x37   : > { %1494 = dma.done.wait (%p44_p1), [#allocation9], 512  }
  0x38   : > { %1496 = vsyncadd (%p44_p1), [#allocation9], 4294966784  ;;  %v308_v0 = vld [vmem:[%s260_s13] sm:$0xff]  ;;  %v310_v1 = vld [vmem:[#allocation5 + $0x8] sm:$0xff]  ;;  %s1523_s26 = smov 96   ;;  %s1524_s7 = smov 112  }
  0x39   : > { %v312_v2 = vld [vmem:[#allocation7 + $0x8] sm:$0xff]  ;;  %405 = vrot.lane.b32.xlu1 %v308_v0, %s1523_s26  ;;  %361 = vrot.lane.b32.xlu0 %v308_v0, %s1524_s7  ;;  %v309_v3 = vld [vmem:[#allocation5] sm:$0xff]  ;;  %v311_v4 = vld [vmem:[#allocation7] sm:$0xff]  ;;  %vm317_vm0 = vcmask 130048   ;;  %s1525_s23 = smov 80   ;;  %vm500_vm1 = vcmask 1040384  }
  0x3a   : > { %335 = vmatpush.msra.mxu0 %v310_v1  ;;  %355 = vmatpush.msra.mxu1 %v312_v2  ;;  %v1699_v5 = vld [vmem:[#allocation8 + $0x8] sm:$0x1]  ;;  %v1701_v6 = vld [vmem:[#allocation8] sm:$0xff]  ;;  %vm496_vm2 = vcmask 72704   ;;  %v1725_v15 = vld [vmem:[#allocation10 + $0x8] sm:$0x1] }
  0x3b   : > { %379 = vmatpush.msra.mxu2 %v310_v1  ;;  %399 = vmatpush.msra.mxu3 %v312_v2  ;;  %v1727_v16 = vld [vmem:[#allocation10] sm:$0xff]  ;;  %s1148_s24 = sshll.u32 %s1678_s10, 4  ;;  %s1526_s28 = smov 32   ;;  %vm592_vm3 = vcmask 654848   ;;  %vm585_vm4 = vcmask 261248   ;;  %vm651_vm5 = vcmask 392448  }
  0x3c   : > { %336 = vmatpush.msra.mxu0 %v309_v3  ;;  %356 = vmatpush.msra.mxu1 %v311_v4  ;;  %s1783_s27 = scalar_lea.vmem [#allocation11], %s1148_s24  ;;  %s1527_s30 = smov 64   ;;  %vm712_vm6 = vcmask 523648   ;;  %vm750_vm7 = vcmask 786048   ;;  %vm809_vm8 = vcmask 917248   ;;  %vm874_vm9 = vcmask 1048448  }
  0x3d   : > { %1149 = vmatmul.msk.f32.vlgmr.msra.gmra.mxu0 %vm317_vm0, %v308_v0  ;;  %1150 = vmatmul.msk.f32.vlgmr.msra.gmra.mxu1 %vm317_vm0, %v308_v0  ;;  %s1528_s6 = smov 16   ;;  %s1529_s14 = smov 48  }
  0x3e   : > { %423 = vmatpush.msrb.mxu0 %v310_v1  ;;  %443 = vmatpush.msrb.mxu1 %v312_v2  ;;  %s1194_s15 = sshll.u32 %s1584_s25, 4  ;;  %s1022_s22 = sshll.u32 %s1783_s27, 4  ;;  %s1023_s22 = int_to_ptr.vmem [resolvable:$true] %s1022_s22 }
  0x3f   : > { %380 = vmatpush.msra.mxu2 %v309_v3  ;;  %400 = vmatpush.msra.mxu3 %v311_v4  ;;  %s1020_s17 = scalar_lea.hbm %s1865_s5, %s1194_s15  ;;  %s1009_s25 = scalar_lea.sflag [#allocation4], %s1678_s10 }
  0x40   : > { %424 = vmatpush.msrb.mxu0 %v309_v3  ;;  %444 = vmatpush.msrb.mxu1 %v311_v4  ;;  %s1024_s13 = sshll.u32 %s1020_s17, 4  ;;  %s1025_s13 = int_to_ptr.hbm [resolvable:$true] %s1024_s13 }
  0x41   : > { %449 = vrot.lane.b32.xlu0 %v308_v0, %s1525_s23  ;;  %467 = vmatpush.msrb.mxu2 %v310_v1 }
  0x42   : > { %487 = vmatpush.msrb.mxu3 %v312_v2  ;;  %1157 = vmatpush.msk.msra.mxu0 %vm500_vm1, %v1699_v5 }
  0x43   : > { %468 = vmatpush.msrb.mxu2 %v309_v3  ;;  %1159 = vmatpush.msk.msra.mxu1 %vm500_vm1, %v1699_v5 }
  0x44   : > { %488 = vmatpush.msrb.mxu3 %v311_v4  ;;  %519 = vmatpush.msra.mxu0 %v1701_v6 }
  0x45   : > { %549 = vmatpush.msra.mxu1 %v1701_v6 }
  0xab   : > { %v406_v7 = vpop.permute.xlu1 %405  ;;  %v362_v8 = vpop.permute.xlu0 %361 }
  0xac   : > { %1151 = vmatmul.msk.f32.vlgmr.msra.gmra.mxu2 %vm317_vm0, %v362_v8  ;;  %1152 = vmatmul.msk.f32.vlgmr.msra.gmra.mxu3 %vm317_vm0, %v362_v8 }
  0xad   : > { %1153 = vmatmul.msk.f32.vlgmr.msrb.gmra.mxu0 %vm317_vm0, %v406_v7  ;;  %1154 = vmatmul.msk.f32.vlgmr.msrb.gmra.mxu1 %vm317_vm0, %v406_v7 }
  0xae   : > { %1163 = vmatpush.msk.msra.mxu3 %vm500_vm1, %v1699_v5  ;;  %1167 = vmatpush.msk.msrb.mxu1 %vm500_vm1, %v1699_v5 }
  0xaf   : > { %1165 = vmatpush.msk.msrb.mxu0 %vm500_vm1, %v1725_v15  ;;  %1161 = vmatpush.msk.msra.mxu2 %vm500_vm1, %v1725_v15 }
  0xb0   : > { %618 = vmatpush.msra.mxu3 %v1701_v6  ;;  %679 = vmatpush.msrb.mxu1 %v1701_v6 }
  0xb1   : > { %641 = vmatpush.msrb.mxu0 %v1727_v16  ;;  %575 = vmatpush.msra.mxu2 %v1727_v16 }
  0xb3   : > { %v450_v9 = vpop.permute.xlu0 %449 }
  0xb4   : > { %1155 = vmatmul.msk.f32.vlgmr.msrb.gmra.mxu2 %vm317_vm0, %v450_v9  ;;  %1156 = vmatmul.msk.f32.vlgmr.msrb.gmra.mxu3 %vm317_vm0, %v450_v9 }
  0xb5   : > { %1171 = vmatpush.msk.msrb.mxu3 %vm500_vm1, %v1699_v5  ;;  %1169 = vmatpush.msk.msrb.mxu2 %vm500_vm1, %v1725_v15 }
  0xb7   : > { %741 = vmatpush.msrb.mxu3 %v1701_v6  ;;  %702 = vmatpush.msrb.mxu2 %v1727_v16 }
  0xba   : > { %v338_v10 = vpop.f32.mrf.mxu0  ;;  %v358_v11 = vpop.f32.mrf.mxu1 }
  0xbb   : > { %v493_v12 = vmul.f32 %v338_v10, %v338_v10  ;;  %v494_v13 = vmul.f32 %v358_v11, %v358_v11 }
  0xbd   : > { %v495_v14 = vadd.f32 %v494_v13, %v493_v12 }
  0xbf   : > { %1158 = vmatmul.msk.f32.vlgmr.msra.gmra.mxu0 %vm496_vm2, %v495_v14 }
  0xc0   : > { %1173 = vmatpush.msk.msra.mxu0 %vm500_vm1, %v1699_v5 }
  0xc2   : > { %776 = vmatpush.msra.mxu0 %v1701_v6 }
 0x12a   : > { %v1741_v17 = vpop.f32.mrf.mxu0  ;;  %v1743_v18 = vpop.f32.mrf.mxu1 }
 0x12b   : > { %v594_v19 = vmul.f32 %v1741_v17, %v338_v10  ;;  %v595_v20 = vmul.f32 %v1743_v18, %v358_v11  ;;  %v597_v21 = vmul.f32 %v1741_v17, %v358_v11  ;;  %v598_v22 = vmul.f32 %v1743_v18, %v338_v10 }
 0x12c   : > { %v882_v41 = vmul.f32 %v1741_v17, %v1741_v17  ;;  %v883_v48 = vmul.f32 %v1743_v18, %v1743_v18 }
 0x12d   : > { %v596_v23 = vadd.f32 %v595_v20, %v594_v19  ;;  %v599_v24 = vsub.f32 %v597_v21, %v598_v22 }
 0x12e   : > { %v884_v53 = vadd.f32 %v883_v48, %v882_v41 }
 0x12f   : > { %1164 = vmatmul.msk.f32.vlgmr.msra.gmra.mxu3 %vm496_vm2, %v596_v23  ;;  %1166 = vmatmul.msk.f32.vlgmr.msrb.gmra.mxu0 %vm496_vm2, %v599_v24  ;;  %v382_v25 = vpop.f32.mrf.mxu2  ;;  %v402_v26 = vpop.f32.mrf.mxu3 }
 0x130   : > { %v525_v27 = vmul.f32 %v382_v25, %v338_v10  ;;  %v526_v28 = vmul.f32 %v402_v26, %v358_v11  ;;  %v528_v29 = vmul.f32 %v382_v25, %v358_v11  ;;  %v529_v30 = vmul.f32 %v402_v26, %v338_v10  ;;  %1179 = vmatpush.msk.msra.mxu3 %vm500_vm1, %v1725_v15 }
 0x131   : > { %v720_v31 = vmul.f32 %v382_v25, %v382_v25  ;;  %v721_v32 = vmul.f32 %v402_v26, %v402_v26  ;;  %v752_v33 = vmul.f32 %v1741_v17, %v382_v25  ;;  %v753_v34 = vmul.f32 %v1743_v18, %v402_v26  ;;  %1181 = vmatpush.msk.msrb.mxu0 %vm500_vm1, %v1699_v5 }
 0x132   : > { %v527_v35 = vadd.f32 %v526_v28, %v525_v27  ;;  %v530_v36 = vsub.f32 %v528_v29, %v529_v30  ;;  %864 = vmatpush.msra.mxu3 %v1727_v16  ;;  %v755_v54 = vmul.f32 %v1741_v17, %v402_v26  ;;  %v756_v55 = vmul.f32 %v1743_v18, %v382_v25 }
 0x133   : > { %903 = vmatpush.msrb.mxu0 %v1701_v6  ;;  %v722_v37 = vadd.f32 %v721_v32, %v720_v31  ;;  %v754_v38 = vadd.f32 %v753_v34, %v752_v33 }
 0x134   : > { %1160 = vmatmul.msk.f32.vlgmr.msra.gmra.mxu1 %vm496_vm2, %v527_v35  ;;  %1162 = vmatmul.msk.f32.vlgmr.msra.gmra.mxu2 %vm496_vm2, %v530_v36  ;;  %v757_v60 = vsub.f32 %v755_v54, %v756_v55 }
 0x135   : > { %1177 = vmatpush.msk.msra.mxu2 %vm500_vm1, %v1699_v5  ;;  %1175 = vmatpush.msk.msra.mxu1 %vm500_vm1, %v1725_v15 }
 0x137   : > { %1172 = vmatmul.msk.f32.vlgmr.msrb.gmra.mxu3 %vm496_vm2, %v722_v37  ;;  %1174 = vmatmul.msk.f32.vlgmr.msra.gmra.mxu0 %vm496_vm2, %v754_v38  ;;  %v470_v39 = vpop.f32.mrf.mxu2  ;;  %v490_v40 = vpop.f32.mrf.mxu3 }
 0x138   : > { %v655_v42 = vmul.f32 %v470_v39, %v338_v10  ;;  %v656_v43 = vmul.f32 %v490_v40, %v358_v11  ;;  %v658_v44 = vmul.f32 %v470_v39, %v358_v11  ;;  %v659_v45 = vmul.f32 %v490_v40, %v338_v10  ;;  %841 = vmatpush.msra.mxu2 %v1701_v6 }
 0x139   : > { %v820_v46 = vmul.f32 %v470_v39, %v402_v26  ;;  %v821_v47 = vmul.f32 %v490_v40, %v382_v25  ;;  %799 = vmatpush.msra.mxu1 %v1727_v16  ;;  %1187 = vmatpush.msk.msrb.mxu3 %vm500_vm1, %v1699_v5  ;;  %v817_v56 = vmul.f32 %v470_v39, %v382_v25 }
 0x13a   : > { %v657_v49 = vadd.f32 %v656_v43, %v655_v42  ;;  %v660_v50 = vsub.f32 %v658_v44, %v659_v45  ;;  %v818_v57 = vmul.f32 %v490_v40, %v402_v26  ;;  %v977_v58 = vmul.f32 %v470_v39, %v470_v39 }
 0x13b   : > { %998 = vmatpush.msrb.mxu3 %v1701_v6  ;;  %v822_v52 = vsub.f32 %v820_v46, %v821_v47  ;;  %v978_v59 = vmul.f32 %v490_v40, %v490_v40  ;;  %v913_v63 = vmul.f32 %v470_v39, %v1741_v17  ;;  %v914_v0 = vmul.f32 %v490_v40, %v1743_v18 }
 0x13c   : > { %1168 = vmatmul.msk.f32.vlgmr.msrb.gmra.mxu1 %vm496_vm2, %v657_v49  ;;  %1170 = vmatmul.msk.f32.vlgmr.msrb.gmra.mxu2 %vm496_vm2, %v660_v50  ;;  %v521_v51 = vpop.f32.mrf.mxu0  ;;  %v819_v61 = vadd.f32 %v818_v57, %v817_v56  ;;  %v916_v1 = vmul.f32 %v470_v39, %v1743_v18  ;;  %v917_v2 = vmul.f32 %v490_v40, %v1741_v17 }
 0x13d   : > { %1185 = vmatpush.msk.msrb.mxu2 %vm500_vm1, %v1725_v15  ;;  %1183 = vmatpush.msk.msrb.mxu1 %vm500_vm1, %v1699_v5  ;;  %524 = vst.msk [vmem:[%s1783_s27] sm:$0xff] %vm317_vm0, %v521_v51  ;;  %v979_v62 = vadd.f32 %v978_v59, %v977_v58  ;;  %v915_v3 = vadd.f32 %v914_v0, %v913_v63 }
 0x13e   : > { %v918_v4 = vsub.f32 %v916_v1, %v917_v2 }
 0x13f   : > { %1180 = vmatmul.msk.f32.vlgmr.msra.gmra.mxu3 %vm496_vm2, %v822_v52  ;;  %1182 = vmatmul.msk.f32.vlgmr.msrb.gmra.mxu0 %vm496_vm2, %v884_v53 }
 0x140   : > { %960 = vmatpush.msrb.mxu2 %v1727_v16  ;;  %937 = vmatpush.msrb.mxu1 %v1701_v6 }
 0x144   : > { %1176 = vmatmul.msk.f32.vlgmr.msra.gmra.mxu1 %vm496_vm2, %v757_v60  ;;  %1178 = vmatmul.msk.f32.vlgmr.msra.gmra.mxu2 %vm496_vm2, %v819_v61 }
 0x147   : > { %1188 = vmatmul.msk.f32.vlgmr.msrb.gmra.mxu3 %vm496_vm2, %v979_v62 }
 0x14c   : > { %1184 = vmatmul.msk.f32.vlgmr.msrb.gmra.mxu1 %vm496_vm2, %v915_v3  ;;  %1186 = vmatmul.msk.f32.vlgmr.msrb.gmra.mxu2 %vm496_vm2, %v918_v4 }
 0x1ac   : > { %v643_v5 = vpop.f32.mrf.mxu0 }
 0x1b1   : > { %v551_v6 = vpop.f32.mrf.mxu1 }
 0x1b2   : > { %v620_v7 = vpop.f32.mrf.mxu3 }
 0x1b3   : > { %v646_v8 = vadd.f32 %v643_v5, %v620_v7  ;;  %v653_v9 = vsub.f32 %v620_v7, %v643_v5 }
 0x1b4   : > { %v778_v12 = vpop.f32.mrf.mxu0 }
 0x1b5   : > { %654 = vst.msk [vmem:[%s1783_s27 + $0x8] sm:$0xff] %vm317_vm0, %v653_v9  ;;  %648 = vrot.lane.b32.xlu1 %v646_v8, %s1526_s28 }
 0x1b7   : > { %v577_v10 = vpop.f32.mrf.mxu2 }
 0x1b8   : > { %v587_v11 = vsub.f32 %v551_v6, %v577_v10  ;;  %v580_v13 = vadd.f32 %v577_v10, %v551_v6 }
 0x1b9   : > { %v681_v14 = vpop.f32.mrf.mxu1 }
 0x1ba   : > { %589 = vrot.lane.b32.xlu2 %v587_v11, %s1527_s30  ;;  %v743_v16 = vpop.f32.mrf.mxu3 }
 0x1bc   : > { %v905_v18 = vpop.f32.mrf.mxu0 }
 0x1bd   : > { %582 = vrot.lane.b32.xlu1 %v580_v13, %s1528_s6 }
 0x1bf   : > { %v704_v15 = vpop.f32.mrf.mxu2 }
 0x1c0   : > { %v707_v17 = vadd.f32 %v704_v15, %v681_v14  ;;  %v714_v21 = vsub.f32 %v681_v14, %v704_v15 }
 0x1c1   : > { %v801_v19 = vpop.f32.mrf.mxu1 }
 0x1c2   : > { %709 = vrot.lane.b32.xlu0 %v707_v17, %s1529_s14  ;;  %747 = vrot.lane.b32.xlu2 %v743_v16, %s1525_s23  ;;  %v811_v22 = vsub.f32 %v778_v12, %v801_v19  ;;  %v866_v23 = vpop.f32.mrf.mxu3  ;;  %v804_v24 = vadd.f32 %v801_v19, %v778_v12 }
 0x1c5   : > { %909 = vrot.lane.b32.xlu1 %v905_v18, %s1526_s28  ;;  %s1461_s28 = scalar_lea.hbm %s1865_s5, 32 }
 0x1c7   : > { %v843_v20 = vpop.f32.mrf.mxu2 }
 0x1c8   : > { %v876_v27 = vsub.f32 %v843_v20, %v866_v23  ;;  %v869_v30 = vadd.f32 %v866_v23, %v843_v20 }
 0x1c9   : > { %v939_v25 = vpop.f32.mrf.mxu1 }
 0x1ca   : > { %716 = vrot.lane.b32.xlu2 %v714_v21, %s1527_s30  ;;  %813 = vrot.lane.b32.xlu0 %v811_v22, %s1528_s6  ;;  %v1000_v29 = vpop.f32.mrf.mxu3 }
 0x1cd   : > { %806 = vrot.lane.b32.xlu1 %v804_v24, %s1523_s26 }
 0x1cf   : > { %v962_v26 = vpop.f32.mrf.mxu2 }
 0x1d0   : > { %v965_v28 = vadd.f32 %v962_v26, %v939_v25  ;;  %v971_v31 = vsub.f32 %v939_v25, %v962_v26 }
 0x1d2   : > { %878 = vrot.lane.b32.xlu2 %v876_v27, %s1525_s23  ;;  %967 = vrot.lane.b32.xlu0 %v965_v28, %s1529_s14 }
 0x1d5   : > { %1004 = vrot.lane.b32.xlu1 %v1000_v29, %s1524_s7 }
 0x1da   : > { %973 = vrot.lane.b32.xlu2 %v971_v31, %s1523_s26  ;;  %871 = vrot.lane.b32.xlu0 %v869_v30, %s1524_s7  ;;  %s1455_s26 = sshra.s32 %s1025_s13, 4  ;;  %s1456_s26 = int_to_ptr.hbm [resolvable:$true] %s1455_s26 }
 0x1db   : > { %s1457_s7 = scalar_lea.hbm %s1456_s26, 16  ;;  %p1462_p12 = scmp.lt.s32.totalorder %s1456_s26, %s1865_s5 }
 0x1dc   : > { %p1458_p1 = scmp.ne.s32.totalorder %s1456_s26, %s1457_s7  ;;  %p1463_p7 = scmp.lt.s32.totalorder %s1461_s28, %s1457_s7 }
 0x1de   : > { %p1459_p3 = pnand %p1458_p1, %p1647_p4  ;;  %p1464_p8 = por %p1463_p7, %p1462_p12 }
 0x1e0   : > { %p1460_p5 = pneg %p1459_p3 }
 0x1e2   : > { %p1465_p9 = pnand %p1464_p8, %p1460_p5 }
 0x214   : > { %v590_v32 = vpop.permute.xlu2 %589 }
 0x21c   : > { %v748_v33 = vpop.permute.xlu2 %747 }
 0x224   : > { %v717_v34 = vpop.permute.xlu2 %716 }
 0x225   : > { %719 = vst.msk [vmem:[%s1783_s27 + $0x8] sm:$0xff] %vm592_vm3, %v717_v34 }
 0x227   : > { %v649_v35 = vpop.permute.xlu1 %648 }
 0x22c   : > { %v879_v39 = vpop.permute.xlu2 %878 }
 0x22f   : > { %v583_v36 = vpop.permute.xlu1 %582 }
 0x230   : > { %586 = vst.msk [vmem:[%s1783_s27] sm:$0xff] %vm585_vm4, %v583_v36 }
 0x231   : > { %593 = vst.msk [vmem:[%s1783_s27] sm:$0xff] %vm592_vm3, %v590_v32 }
 0x232   : > { %652 = vst.msk [vmem:[%s1783_s27] sm:$0xff] %vm651_vm5, %v649_v35 }
 0x234   : > { %v710_v37 = vpop.permute.xlu0 %709  ;;  %v974_v43 = vpop.permute.xlu2 %973 }
 0x235   : > { %713 = vst.msk [vmem:[%s1783_s27] sm:$0xff] %vm712_vm6, %v710_v37 }
 0x236   : > { %751 = vst.msk [vmem:[%s1783_s27] sm:$0xff] %vm750_vm7, %v748_v33 }
 0x237   : > { %v910_v38 = vpop.permute.xlu1 %909 }
 0x23c   : > { %v814_v40 = vpop.permute.xlu0 %813 }
 0x23d   : > { %816 = vst.msk [vmem:[%s1783_s27 + $0x8] sm:$0xff] %vm585_vm4, %v814_v40 }
 0x23e   : > { %881 = vst.msk [vmem:[%s1783_s27 + $0x8] sm:$0xff] %vm750_vm7, %v879_v39 }
 0x23f   : > { %912 = vst.msk [vmem:[%s1783_s27 + $0x8] sm:$0xff] %vm651_vm5, %v910_v38  ;;  %v807_v41 = vpop.permute.xlu1 %806 }
 0x240   : > { %810 = vst.msk [vmem:[%s1783_s27] sm:$0xff] %vm809_vm8, %v807_v41 }
 0x244   : > { %v968_v42 = vpop.permute.xlu0 %967 }
 0x245   : > { %970 = vst.msk [vmem:[%s1783_s27 + $0x8] sm:$0xff] %vm712_vm6, %v968_v42 }
 0x246   : > { %976 = vst.msk [vmem:[%s1783_s27 + $0x8] sm:$0xff] %vm809_vm8, %v974_v43 }
 0x247   : > { %v1005_v44 = vpop.permute.xlu1 %1004 }
 0x248   : > { %1007 = vst.msk [vmem:[%s1783_s27 + $0x8] sm:$0xff] %vm874_vm9, %v1005_v44 }
 0x24c   : > { %v872_v45 = vpop.permute.xlu0 %871 }
 0x24d   : > { %875 = vst.msk [vmem:[%s1783_s27] sm:$0xff] %vm874_vm9, %v872_v45 }
 0x24e   : > { %1468 = shalt.err (!%p1465_p9)
}
 0x24f   : > { %1213 = dma.vmem_to_hbm [thread:$0]  (%p1647_p4), %s1023_s22, 256, %s1025_s13, %s1009_s25  }
 0x250 PF: > { %s1036_s10 = sand.u32 1, %s1503_s18   ;;  %p1873_p10 = scmp.ge.s32.totalorder %s1515_s21, 2 }
 0x251   : > { %s1037_s27 = scalar_lea.sflag [#allocation4], %s1036_s10 }
 0x252   : > { %p1233_p13 = pnand %p1873_p10, %p1651_p6 }
 0x254   : > { %p1234_p11 = pneg %p1233_p13 }
 0x256   : > { %1498 = dma.done.wait (%p1234_p11), %s1037_s27, 256  }
 0x257   : > { %1500 = vsyncadd (%p1234_p11), %s1037_s27, 4294967040  ;;  %p20_p0 = scmp.ge.s32.totalorder %s1621_s29, 4   ;;  %s1874_s18 = smov %s1507_s19 }
 0x258   : > { %s1875_s19 = smov %s1511_s20  ;;  %s1876_s20 = smov %s1632_s8 }
 0x259   : > { %s1877_s21 = smov %s1621_s29  ;;  %22 = sbr.rel (!%p20_p0) target bundleno = 7 (0x7), region = 101 }
 0x25e   :  { %1043 = vsyncpa [#allocation3], 1 }
 0x25f   :  { %1045 = vsyncpa [#allocation3 + $0x1], 1 }
 0x260   :  { %1046 = vsyncpa [#allocation6], 1 }
 0x261   :  { %1047 = vsyncpa [#allocation9], 1 }
 0x262   :  { %1048 = vsyncpa [#allocation4], 1 }
 0x263   :  { %1050 = vsyncpa [#allocation4 + $0x1], 1 }

</bundles_post_ra>
